<compile_context>
chip_gen: v5e
topology: v5e:2x2
jax: 0.10.0
libtpu: 0.0.40
codegen_flags: <defaults>
</compile_context>

<pallas_src>
import math
import functools

import jax
import jax.numpy as jnp
from jax import lax
from jax.experimental import pallas as pl
from jax.experimental.pallas import tpu as pltpu


# --------------------------- in-kernel helpers -------------------------------

def _layer_norm(x, w, eps=1e-5):
    # x: (T, C) f32, w: (1, C) f32  (bias=False, eps matches torch LayerNorm).
    # Single-pass variance: the two lane reductions are independent (no
    # reduce -> broadcast -> reduce serial chain on the XLU).
    mean = jnp.mean(x, axis=-1, keepdims=True)
    var = jnp.maximum(jnp.mean(x * x, axis=-1, keepdims=True) - mean * mean, 0.0)
    return (x - mean) * lax.rsqrt(var + eps) * w


def _gelu_exact(x):
    # exact-erf GELU: matches torch.nn.GELU() default
    return 0.5 * x * (1.0 + lax.erf(x * (1.0 / math.sqrt(2.0))))


# ----------------------- Kernel A: LN1 + QKV projection ----------------------

def qkv_proj_kernel(x_ref, ln1_w_ref, wqkv_ref, q_ref, k_ref, v_ref, *,
                    n_head, d_model):
    hd = d_model // n_head
    x = x_ref[0].astype(jnp.float32)                          # (TT, C)
    xn = _layer_norm(x, ln1_w_ref[...])
    qkv = jnp.dot(xn.astype(jnp.bfloat16), wqkv_ref[...],
                  preferred_element_type=jnp.float32)         # (TT, 3C) f32
    qkv = qkv.astype(jnp.bfloat16)                            # cast once, slice bf16
    # Head-major stores: pay the lane->head relayout once per row tile so the
    # attention kv inner loop stays free of per-head slicing / repack.
    # TODO(synk): for hd < 128 these stores are not lane-dense; a single
    #             pltpu.einshape relayout would be cheaper.
    for h in range(n_head):
        q_ref[0, h] = qkv[:, 0 * d_model + h * hd: 0 * d_model + (h + 1) * hd]
        k_ref[0, h] = qkv[:, 1 * d_model + h * hd: 1 * d_model + (h + 1) * hd]
        v_ref[0, h] = qkv[:, 2 * d_model + h * hd: 2 * d_model + (h + 1) * hd]


# ------------- Kernel B: flash attention + out-proj + residual 1 -------------

def attn_kernel(x_ref, q_ref, k_ref, v_ref, wproj_ref, o_ref,
                m_sc, l_sc, acc_sc, *, n_head):
    kv_i = pl.program_id(2)
    n_kv = pl.num_programs(2)

    @pl.when(kv_i == 0)
    def _():
        m_sc[...] = jnp.full(m_sc.shape, -jnp.inf, jnp.float32)
        l_sc[...] = jnp.zeros(l_sc.shape, jnp.float32)
        acc_sc[...] = jnp.zeros(acc_sc.shape, jnp.float32)

    q_b = q_ref[0]                                            # (H, TQ, hd) bf16
    k_b = k_ref[0]                                            # (H, TK, hd) bf16
    v_b = v_ref[0]                                            # (H, TK, hd) bf16

    # Batched per-head scores; contraction over hd of both operands (no k.T).
    # q was pre-scaled by 1/sqrt(hd) via weight folding in the wrapper.
    s = jnp.einsum('hqd,hkd->hqk', q_b, k_b,
                   preferred_element_type=jnp.float32)        # (H, TQ, TK) f32

    # 3-D keepdims online-softmax stats: TK stays on lanes throughout, no
    # lane<->sublane relayout in the inner loop.
    m_prev = m_sc[...]                                        # (H, TQ, 1)
    m_new = jnp.maximum(m_prev, jnp.max(s, axis=-1, keepdims=True))
    alpha = jnp.exp(m_prev - m_new)                           # (H, TQ, 1)
    p = jnp.exp(s - m_new)                                    # (H, TQ, TK)

    l_sc[...] = alpha * l_sc[...] + jnp.sum(p, axis=-1, keepdims=True)
    acc_sc[...] = alpha * acc_sc[...] + jnp.einsum(
        'hqk,hkd->hqd', p.astype(jnp.bfloat16), v_b,
        preferred_element_type=jnp.float32)                   # (H, TQ, hd)
    m_sc[...] = m_new

    @pl.when(kv_i == n_kv - 1)
    def _():
        inv_l = pl.reciprocal(l_sc[...], approx=True)         # (H, TQ, 1) on EUP
        y = (acc_sc[...] * inv_l).astype(jnp.bfloat16)        # (H, TQ, hd)
        # Output projection as an accumulation of per-head dots against static
        # (hd, C) row-blocks of w_proj — no cross-lane head concat / repack.
        proj = jnp.dot(y[0], wproj_ref[0], preferred_element_type=jnp.float32)
        for h in range(1, n_head):
            proj = proj + jnp.dot(y[h], wproj_ref[h],
                                  preferred_element_type=jnp.float32)
        o_ref[0] = (x_ref[0].astype(jnp.float32) + proj).astype(o_ref.dtype)


# ------------- Kernel C: LN2 + FFN (streamed F chunks) + residual 2 ----------

def ffn_kernel(x_ref, ln2_w_ref, w1_ref, w2_ref, o_ref, xn2_sc, acc_sc):
    f_i = pl.program_id(2)

    @pl.when(f_i == 0)
    def _():
        x1 = x_ref[0].astype(jnp.float32)
        xn2_sc[...] = _layer_norm(x1, ln2_w_ref[...]).astype(jnp.bfloat16)
        acc_sc[...] = jnp.zeros(acc_sc.shape, jnp.float32)

    h1 = jnp.dot(xn2_sc[...], w1_ref[...],
                 preferred_element_type=jnp.float32)          # (TR, FC) f32
    acc_sc[...] += jnp.dot(_gelu_exact(h1).astype(jnp.bfloat16), w2_ref[...],
                           preferred_element_type=jnp.float32)

    @pl.when(f_i == pl.num_programs(2) - 1)
    def _():
        o_ref[0] = (x_ref[0].astype(jnp.float32) + acc_sc[...]).astype(o_ref.dtype)


# ------------------------------- wrapper --------------------------------------

def _tpu_vmem_capacity():
    try:
        return int(pltpu.get_tpu_info().vmem_capacity_bytes)   # 64 MiB on v7x
    except Exception:
        return 128 * 1024 * 1024


def _vmem_limit(est_bytes):
    cap = _tpu_vmem_capacity()
    # 2x margin over the static estimate for compiler temporaries / spills,
    # floored at 16 MiB, capped at 90% of the chip's physical VMEM.
    return max(min(2 * est_bytes + (8 << 20), int(cap * 0.9)), 16 << 20)


def _pick_tile(n, prefs):
    for p in prefs:
        if n % p == 0:
            return p
    return n


def transformer_encoder_layer(x, params, *, n_head):
    """x: (B, T, C) float32. params: dict of weights, all (in, out) layout."""
    B, T, C = x.shape
    assert C % n_head == 0
    hd = C // n_head
    F = params["w_ff1"].shape[1]
    scale = 1.0 / math.sqrt(hd)
    bf16 = jnp.bfloat16

    # ---- tile sizes ---------------------------------------------------------
    # Large row / query tiles amortize per-grid-step overhead and multiply MXU
    # work per DMA'd k/v byte; TK=256 fills the 256-deep MXU on v6e/v7x.
    TT = _pick_tile(T, (512, 256, 128))
    TQ = _pick_tile(T, (512, 256, 128))
    # v7x has 2 TensorCores: keep at least 2 blocks of parallel work if possible.
    while TQ > 128 and B * (T // TQ) < 2 and T % (TQ // 2) == 0:
        TQ //= 2
    TK = _pick_tile(T, (256, 128))
    TR = _pick_tile(T, (512, 256, 128))
    FC = _pick_tile(F, (512, 256, 128))

    # ---- weights ------------------------------------------------------------
    # bf16 weights for the MXU; fold 1/sqrt(hd) into the q columns of the QKV
    # weight in f32 before the cast.  w_proj is pre-reshaped to (H, hd, C) so
    # the attention epilogue can index per-head row blocks statically.
    col_scale = jnp.concatenate(
        [jnp.full((C,), scale, jnp.float32), jnp.ones((2 * C,), jnp.float32)])
    w_qkv = (params["w_qkv"].astype(jnp.float32) * col_scale[None, :]).astype(bf16)
    w_proj = params["w_proj"].astype(bf16).reshape(n_head, hd, C)
    w_ff1 = params["w_ff1"].astype(bf16)
    w_ff2 = params["w_ff2"].astype(bf16)
    ln1_w = params["ln1_w"].astype(jnp.float32)
    ln2_w = params["ln2_w"].astype(jnp.float32)

    # Small weights resident in VMEM, single-buffered (not pipelined).
    wspec = pl.BlockSpec(memory_space=pltpu.MemorySpace.VMEM)

    # ---------------- Kernel A: LN1 + QKV projection ----------------
    est_a = (C * 4 + 3 * C * C * 2                                   # residents
             + 2 * (TT * C * 4 + 3 * TT * C * 2)                     # dbl-buffered blocks
             + 4 * TT * 3 * C * 4)                                   # f32 temporaries
    q, k, v = pl.pallas_call(
        functools.partial(qkv_proj_kernel, n_head=n_head, d_model=C),
        grid=(B, T // TT),
        in_specs=[
            pl.BlockSpec((1, TT, C), lambda b, t: (b, t, 0)),        # x tile
            wspec,                                                   # ln1 weight
            wspec,                                                   # w_qkv (scaled)
        ],
        out_specs=[pl.BlockSpec((1, n_head, TT, hd),
                                lambda b, t: (b, 0, t, 0))] * 3,
        out_shape=[jax.ShapeDtypeStruct((B, n_head, T, hd), bf16)] * 3,
        compiler_params=pltpu.CompilerParams(
            dimension_semantics=("parallel", "parallel"),
            vmem_limit_bytes=_vmem_limit(est_a)),
    )(x, ln1_w, w_qkv)

    # -------- Kernel B: flash attention + out-proj + residual 1 --------
    est_b = (C * C * 2                                               # resident w_proj
             + 2 * (2 * TQ * C * 4 + TQ * C * 2 + 2 * TK * C * 2)    # blocks (x, out, q, k, v)
             + (2 * n_head * TQ * 4 + TQ * C * 4)                    # scratch
             + 3 * n_head * TQ * TK * 4)                             # score/p temps
    x1 = pl.pallas_call(
        functools.partial(attn_kernel, n_head=n_head),
        grid=(B, T // TQ, T // TK),
        in_specs=[
            pl.BlockSpec((1, TQ, C), lambda b, qi, ki: (b, qi, 0)),              # x
            pl.BlockSpec((1, n_head, TQ, hd), lambda b, qi, ki: (b, 0, qi, 0)),  # q
            pl.BlockSpec((1, n_head, TK, hd), lambda b, qi, ki: (b, 0, ki, 0)),  # k
            pl.BlockSpec((1, n_head, TK, hd), lambda b, qi, ki: (b, 0, ki, 0)),  # v
            wspec,                                                               # w_proj (H,hd,C)
        ],
        out_specs=pl.BlockSpec((1, TQ, C), lambda b, qi, ki: (b, qi, 0)),
        out_shape=jax.ShapeDtypeStruct((B, T, C), jnp.float32),
        scratch_shapes=[
            pltpu.VMEM((n_head, TQ, 1), jnp.float32),     # running max   m
            pltpu.VMEM((n_head, TQ, 1), jnp.float32),     # running denom l
            pltpu.VMEM((n_head, TQ, hd), jnp.float32),    # output accumulator
        ],
        compiler_params=pltpu.CompilerParams(
            dimension_semantics=("parallel", "parallel", "arbitrary"),
            vmem_limit_bytes=_vmem_limit(est_b)),
    )(x, q, k, v, w_proj)

    # -------- Kernel C: LN2 + FFN (streamed F chunks) + residual 2 --------
    est_c = (C * 4                                                   # resident ln2_w
             + 2 * (2 * TR * C * 4 + 2 * C * FC * 2)                 # blocks (x1, out, w1, w2)
             + (TR * C * 2 + TR * C * 4)                             # scratch
             + 2 * TR * FC * 4)                                      # h1 / gelu temps
    out = pl.pallas_call(
        ffn_kernel,
        grid=(B, T // TR, F // FC),
        in_specs=[
            pl.BlockSpec((1, TR, C), lambda b, t, f: (b, t, 0)),     # x1 tile
            wspec,                                                   # ln2 weight
            pl.BlockSpec((C, FC), lambda b, t, f: (0, f)),           # w_ff1 F-chunk
            pl.BlockSpec((FC, C), lambda b, t, f: (f, 0)),           # w_ff2 F-chunk
        ],
        out_specs=pl.BlockSpec((1, TR, C), lambda b, t, f: (b, t, 0)),
        out_shape=jax.ShapeDtypeStruct((B, T, C), x.dtype),
        scratch_shapes=[
            pltpu.VMEM((TR, C), bf16),                    # LN2(x1) cached across F steps
            pltpu.VMEM((TR, C), jnp.float32),             # FFN accumulator
        ],
        compiler_params=pltpu.CompilerParams(
            dimension_semantics=("parallel", "parallel", "arbitrary"),
            vmem_limit_bytes=_vmem_limit(est_c)),
    )(x1, ln2_w, w_ff1, w_ff2)
    return out


# --------------------------- pure-JAX reference --------------------------------

def reference(x, params, *, n_head):
    B, T, C = x.shape
    hd = C // n_head

    def ln(v, w):
        m = jnp.mean(v, axis=-1, keepdims=True)
        s = jnp.mean((v - m) ** 2, axis=-1, keepdims=True)
        return (v - m) / jnp.sqrt(s + 1e-5) * w

    xn = ln(x, params["ln1_w"][0])
    qkv = xn @ params["w_qkv"]
    q, k, v = jnp.split(qkv, 3, axis=-1)
    q = q.reshape(B, T, n_head, hd).transpose(0, 2, 1, 3)
    k = k.reshape(B, T, n_head, hd).transpose(0, 2, 1, 3)
    v = v.reshape(B, T, n_head, hd).transpose(0, 2, 1, 3)
    s = jnp.einsum("bhqd,bhkd->bhqk", q, k) / math.sqrt(hd)
    p = jax.nn.softmax(s, axis=-1)
    y = jnp.einsum("bhqk,bhkd->bhqd", p, v)
    y = y.transpose(0, 2, 1, 3).reshape(B, T, C) @ params["w_proj"]
    x = x + y

    xn2 = ln(x, params["ln2_w"][0])
    h1 = xn2 @ params["w_ff1"]
    g = 0.5 * h1 * (1.0 + lax.erf(h1 / math.sqrt(2.0)))
    x = x + g @ params["w_ff2"]
    return x


# ----------------------------------- main ---------------------------------------

if __name__ == "__main__":
    B, T, C = 2, 8, 32
    n_head = 4
    F = 4 * C  # dim_feedforward default = 4 * d_model

    key = jax.random.PRNGKey(0)
    kx, k1, k2, k3, k4 = jax.random.split(key, 5)

    x = jax.random.normal(kx, (B, T, C), dtype=jnp.float32)

    params = {
        "ln1_w": jnp.ones((1, C), jnp.float32),
        "w_qkv": jax.random.normal(k1, (C, 3 * C), jnp.float32) * 0.05,
        "w_proj": jax.random.normal(k2, (C, C), jnp.float32) * 0.05,
        "ln2_w": jnp.ones((1, C), jnp.float32),
        "w_ff1": jax.random.normal(k3, (C, F), jnp.float32) * 0.05,
        "w_ff2": jax.random.normal(k4, (F, C), jnp.float32) * 0.05,
    }

    out = transformer_encoder_layer(x, params, n_head=n_head)
    out = jax.block_until_ready(out)

    ref = reference(x, params, n_head=n_head)
    err = float(jnp.max(jnp.abs(out - ref)))
    assert out.shape == (B, T, C)
    # bf16 MXU operands + approximate reciprocal -> looser tolerance than pure f32.
    assert jnp.allclose(out, ref, atol=3e-2, rtol=3e-2), f"max err {err}"

    print("KERNEL_OK")
</pallas_src>

<mosaic_0001>
module attributes {stable_mosaic.version = 11 : i64} {
  func.func @qkv_proj_kernel(%arg0: i32, %arg1: i32, %arg2: memref<1x8x32xf32, #tpu.memory_space<vmem>>, %arg3: memref<1x32xf32, #tpu.memory_space<vmem>>, %arg4: memref<32x96xbf16, #tpu.memory_space<vmem>>, %arg5: memref<1x4x8x8xbf16, #tpu.memory_space<vmem>>, %arg6: memref<1x4x8x8xbf16, #tpu.memory_space<vmem>>, %arg7: memref<1x4x8x8xbf16, #tpu.memory_space<vmem>>) attributes {dimension_semantics = [#tpu.dimension_semantics<parallel>, #tpu.dimension_semantics<parallel>], iteration_bounds = array<i64: 2, 1>, scalar_prefetch = 0 : i64, scratch_operands = 0 : i64, tpu.core_type = #tpu.core_type<tc>, window_params = [{transform_indices = @transform_0, window_bounds = array<i64: 1, 8, 32>}, {pipeline_mode = #tpu.pipeline_mode<synchronous>, transform_indices = @transform_1, window_bounds = array<i64: 1, 32>}, {pipeline_mode = #tpu.pipeline_mode<synchronous>, transform_indices = @transform_2, window_bounds = array<i64: 32, 96>}, {transform_indices = @transform_3, window_bounds = array<i64: 1, 4, 8, 8>}, {transform_indices = @transform_4, window_bounds = array<i64: 1, 4, 8, 8>}, {transform_indices = @transform_5, window_bounds = array<i64: 1, 4, 8, 8>}]} {
    %c0 = arith.constant 0 : index
    %c0_0 = arith.constant 0 : index
    %c0_1 = arith.constant 0 : index
    %0 = vector.load %arg2[%c0, %c0_0, %c0_1] : memref<1x8x32xf32, #tpu.memory_space<vmem>>, vector<1x8x32xf32>
    %1 = vector.shape_cast %0 : vector<1x8x32xf32> to vector<8x32xf32>
    %c0_2 = arith.constant 0 : index
    %c0_3 = arith.constant 0 : index
    %2 = vector.load %arg3[%c0_2, %c0_3] : memref<1x32xf32, #tpu.memory_space<vmem>>, vector<1x32xf32>
    %cst = arith.constant dense<0.000000e+00> : vector<8xf32>
    %3 = vector.multi_reduction <add>, %1, %cst [1] : vector<8x32xf32> to vector<8xf32>
    %4 = vector.shape_cast %3 : vector<8xf32> to vector<8x1xf32>
    %cst_4 = arith.constant 3.200000e+01 : f32
    %5 = vector.broadcast %cst_4 : f32 to vector<8x1xf32>
    %6 = arith.divf %4, %5 : vector<8x1xf32>
    %7 = arith.mulf %1, %1 : vector<8x32xf32>
    %cst_5 = arith.constant dense<0.000000e+00> : vector<8xf32>
    %8 = vector.multi_reduction <add>, %7, %cst_5 [1] : vector<8x32xf32> to vector<8xf32>
    %9 = vector.shape_cast %8 : vector<8xf32> to vector<8x1xf32>
    %cst_6 = arith.constant 3.200000e+01 : f32
    %10 = vector.broadcast %cst_6 : f32 to vector<8x1xf32>
    %11 = arith.divf %9, %10 : vector<8x1xf32>
    %12 = arith.mulf %6, %6 : vector<8x1xf32>
    %13 = arith.subf %11, %12 : vector<8x1xf32>
    %cst_7 = arith.constant 0.000000e+00 : f32
    %14 = vector.broadcast %cst_7 : f32 to vector<8x1xf32>
    %15 = arith.maximumf %13, %14 : vector<8x1xf32>
    %16 = vector.broadcast %6 : vector<8x1xf32> to vector<8x32xf32>
    %17 = arith.subf %1, %16 : vector<8x32xf32>
    %cst_8 = arith.constant 9.99999974E-6 : f32
    %18 = vector.broadcast %cst_8 : f32 to vector<8x1xf32>
    %19 = arith.addf %15, %18 : vector<8x1xf32>
    %20 = math.rsqrt %19 : vector<8x1xf32>
    %21 = vector.broadcast %20 : vector<8x1xf32> to vector<8x32xf32>
    %22 = arith.mulf %17, %21 : vector<8x32xf32>
    %23 = vector.broadcast %2 : vector<1x32xf32> to vector<8x32xf32>
    %24 = arith.mulf %22, %23 : vector<8x32xf32>
    %25 = arith.truncf %24 : vector<8x32xf32> to vector<8x32xbf16>
    %c0_9 = arith.constant 0 : index
    %c0_10 = arith.constant 0 : index
    %26 = vector.load %arg4[%c0_9, %c0_10] : memref<32x96xbf16, #tpu.memory_space<vmem>>, vector<32x96xbf16>
    %cst_11 = arith.constant dense<0.000000e+00> : vector<8x96xf32>
    %27 = tpu.matmul %25, %26, %cst_11 {dimension_numbers = #tpu.dot_dimension_numbers<[1], [0], [0], [1], [0, 0, 1, 1], [], []>} : vector<8x32xbf16>, vector<32x96xbf16>, vector<8x96xf32> -> vector<8x96xf32>
    %28 = arith.truncf %27 : vector<8x96xf32> to vector<8x96xbf16>
    %29 = vector.extract_strided_slice %28 {offsets = [0, 0], sizes = [8, 8], strides = [1, 1]} : vector<8x96xbf16> to vector<8x8xbf16>
    %c0_12 = arith.constant 0 : index
    %c0_13 = arith.constant 0 : index
    %c0_14 = arith.constant 0 : index
    %c0_15 = arith.constant 0 : index
    %30 = vector.load %arg5[%c0_12, %c0_13, %c0_14, %c0_15] : memref<1x4x8x8xbf16, #tpu.memory_space<vmem>>, vector<1x1x8x8xbf16>
    %31 = vector.shape_cast %30 : vector<1x1x8x8xbf16> to vector<8x8xbf16>
    %32 = vector.shape_cast %29 : vector<8x8xbf16> to vector<1x1x8x8xbf16>
    tpu.vector_store %arg5[%c0_12, %c0_13, %c0_14, %c0_15], %32 {strides = array<i32>} : memref<1x4x8x8xbf16, #tpu.memory_space<vmem>>, vector<1x1x8x8xbf16>,
    %33 = vector.extract_strided_slice %28 {offsets = [0, 32], sizes = [8, 8], strides = [1, 1]} : vector<8x96xbf16> to vector<8x8xbf16>
    %c0_16 = arith.constant 0 : index
    %c0_17 = arith.constant 0 : index
    %c0_18 = arith.constant 0 : index
    %c0_19 = arith.constant 0 : index
    %34 = vector.load %arg6[%c0_16, %c0_17, %c0_18, %c0_19] : memref<1x4x8x8xbf16, #tpu.memory_space<vmem>>, vector<1x1x8x8xbf16>
    %35 = vector.shape_cast %34 : vector<1x1x8x8xbf16> to vector<8x8xbf16>
    %36 = vector.shape_cast %33 : vector<8x8xbf16> to vector<1x1x8x8xbf16>
    tpu.vector_store %arg6[%c0_16, %c0_17, %c0_18, %c0_19], %36 {strides = array<i32>} : memref<1x4x8x8xbf16, #tpu.memory_space<vmem>>, vector<1x1x8x8xbf16>,
    %37 = vector.extract_strided_slice %28 {offsets = [0, 64], sizes = [8, 8], strides = [1, 1]} : vector<8x96xbf16> to vector<8x8xbf16>
    %c0_20 = arith.constant 0 : index
    %c0_21 = arith.constant 0 : index
    %c0_22 = arith.constant 0 : index
    %c0_23 = arith.constant 0 : index
    %38 = vector.load %arg7[%c0_20, %c0_21, %c0_22, %c0_23] : memref<1x4x8x8xbf16, #tpu.memory_space<vmem>>, vector<1x1x8x8xbf16>
    %39 = vector.shape_cast %38 : vector<1x1x8x8xbf16> to vector<8x8xbf16>
    %40 = vector.shape_cast %37 : vector<8x8xbf16> to vector<1x1x8x8xbf16>
    tpu.vector_store %arg7[%c0_20, %c0_21, %c0_22, %c0_23], %40 {strides = array<i32>} : memref<1x4x8x8xbf16, #tpu.memory_space<vmem>>, vector<1x1x8x8xbf16>,
    %41 = vector.extract_strided_slice %28 {offsets = [0, 8], sizes = [8, 8], strides = [1, 1]} : vector<8x96xbf16> to vector<8x8xbf16>
    %c0_24 = arith.constant 0 : index
    %c1 = arith.constant 1 : index
    %c0_25 = arith.constant 0 : index
    %c0_26 = arith.constant 0 : index
    %42 = vector.load %arg5[%c0_24, %c1, %c0_25, %c0_26] : memref<1x4x8x8xbf16, #tpu.memory_space<vmem>>, vector<1x1x8x8xbf16>
    %43 = vector.shape_cast %42 : vector<1x1x8x8xbf16> to vector<8x8xbf16>
    %44 = vector.shape_cast %41 : vector<8x8xbf16> to vector<1x1x8x8xbf16>
    tpu.vector_store %arg5[%c0_24, %c1, %c0_25, %c0_26], %44 {strides = array<i32>} : memref<1x4x8x8xbf16, #tpu.memory_space<vmem>>, vector<1x1x8x8xbf16>,
    %45 = vector.extract_strided_slice %28 {offsets = [0, 40], sizes = [8, 8], strides = [1, 1]} : vector<8x96xbf16> to vector<8x8xbf16>
    %c0_27 = arith.constant 0 : index
    %c1_28 = arith.constant 1 : index
    %c0_29 = arith.constant 0 : index
    %c0_30 = arith.constant 0 : index
    %46 = vector.load %arg6[%c0_27, %c1_28, %c0_29, %c0_30] : memref<1x4x8x8xbf16, #tpu.memory_space<vmem>>, vector<1x1x8x8xbf16>
    %47 = vector.shape_cast %46 : vector<1x1x8x8xbf16> to vector<8x8xbf16>
    %48 = vector.shape_cast %45 : vector<8x8xbf16> to vector<1x1x8x8xbf16>
    tpu.vector_store %arg6[%c0_27, %c1_28, %c0_29, %c0_30], %48 {strides = array<i32>} : memref<1x4x8x8xbf16, #tpu.memory_space<vmem>>, vector<1x1x8x8xbf16>,
    %49 = vector.extract_strided_slice %28 {offsets = [0, 72], sizes = [8, 8], strides = [1, 1]} : vector<8x96xbf16> to vector<8x8xbf16>
    %c0_31 = arith.constant 0 : index
    %c1_32 = arith.constant 1 : index
    %c0_33 = arith.constant 0 : index
    %c0_34 = arith.constant 0 : index
    %50 = vector.load %arg7[%c0_31, %c1_32, %c0_33, %c0_34] : memref<1x4x8x8xbf16, #tpu.memory_space<vmem>>, vector<1x1x8x8xbf16>
    %51 = vector.shape_cast %50 : vector<1x1x8x8xbf16> to vector<8x8xbf16>
    %52 = vector.shape_cast %49 : vector<8x8xbf16> to vector<1x1x8x8xbf16>
    tpu.vector_store %arg7[%c0_31, %c1_32, %c0_33, %c0_34], %52 {strides = array<i32>} : memref<1x4x8x8xbf16, #tpu.memory_space<vmem>>, vector<1x1x8x8xbf16>,
    %53 = vector.extract_strided_slice %28 {offsets = [0, 16], sizes = [8, 8], strides = [1, 1]} : vector<8x96xbf16> to vector<8x8xbf16>
    %c0_35 = arith.constant 0 : index
    %c2 = arith.constant 2 : index
    %c0_36 = arith.constant 0 : index
    %c0_37 = arith.constant 0 : index
    %54 = vector.load %arg5[%c0_35, %c2, %c0_36, %c0_37] : memref<1x4x8x8xbf16, #tpu.memory_space<vmem>>, vector<1x1x8x8xbf16>
    %55 = vector.shape_cast %54 : vector<1x1x8x8xbf16> to vector<8x8xbf16>
    %56 = vector.shape_cast %53 : vector<8x8xbf16> to vector<1x1x8x8xbf16>
    tpu.vector_store %arg5[%c0_35, %c2, %c0_36, %c0_37], %56 {strides = array<i32>} : memref<1x4x8x8xbf16, #tpu.memory_space<vmem>>, vector<1x1x8x8xbf16>,
    %57 = vector.extract_strided_slice %28 {offsets = [0, 48], sizes = [8, 8], strides = [1, 1]} : vector<8x96xbf16> to vector<8x8xbf16>
    %c0_38 = arith.constant 0 : index
    %c2_39 = arith.constant 2 : index
    %c0_40 = arith.constant 0 : index
    %c0_41 = arith.constant 0 : index
    %58 = vector.load %arg6[%c0_38, %c2_39, %c0_40, %c0_41] : memref<1x4x8x8xbf16, #tpu.memory_space<vmem>>, vector<1x1x8x8xbf16>
    %59 = vector.shape_cast %58 : vector<1x1x8x8xbf16> to vector<8x8xbf16>
    %60 = vector.shape_cast %57 : vector<8x8xbf16> to vector<1x1x8x8xbf16>
    tpu.vector_store %arg6[%c0_38, %c2_39, %c0_40, %c0_41], %60 {strides = array<i32>} : memref<1x4x8x8xbf16, #tpu.memory_space<vmem>>, vector<1x1x8x8xbf16>,
    %61 = vector.extract_strided_slice %28 {offsets = [0, 80], sizes = [8, 8], strides = [1, 1]} : vector<8x96xbf16> to vector<8x8xbf16>
    %c0_42 = arith.constant 0 : index
    %c2_43 = arith.constant 2 : index
    %c0_44 = arith.constant 0 : index
    %c0_45 = arith.constant 0 : index
    %62 = vector.load %arg7[%c0_42, %c2_43, %c0_44, %c0_45] : memref<1x4x8x8xbf16, #tpu.memory_space<vmem>>, vector<1x1x8x8xbf16>
    %63 = vector.shape_cast %62 : vector<1x1x8x8xbf16> to vector<8x8xbf16>
    %64 = vector.shape_cast %61 : vector<8x8xbf16> to vector<1x1x8x8xbf16>
    tpu.vector_store %arg7[%c0_42, %c2_43, %c0_44, %c0_45], %64 {strides = array<i32>} : memref<1x4x8x8xbf16, #tpu.memory_space<vmem>>, vector<1x1x8x8xbf16>,
    %65 = vector.extract_strided_slice %28 {offsets = [0, 24], sizes = [8, 8], strides = [1, 1]} : vector<8x96xbf16> to vector<8x8xbf16>
    %c0_46 = arith.constant 0 : index
    %c3 = arith.constant 3 : index
    %c0_47 = arith.constant 0 : index
    %c0_48 = arith.constant 0 : index
    %66 = vector.load %arg5[%c0_46, %c3, %c0_47, %c0_48] : memref<1x4x8x8xbf16, #tpu.memory_space<vmem>>, vector<1x1x8x8xbf16>
    %67 = vector.shape_cast %66 : vector<1x1x8x8xbf16> to vector<8x8xbf16>
    %68 = vector.shape_cast %65 : vector<8x8xbf16> to vector<1x1x8x8xbf16>
    tpu.vector_store %arg5[%c0_46, %c3, %c0_47, %c0_48], %68 {strides = array<i32>} : memref<1x4x8x8xbf16, #tpu.memory_space<vmem>>, vector<1x1x8x8xbf16>,
    %69 = vector.extract_strided_slice %28 {offsets = [0, 56], sizes = [8, 8], strides = [1, 1]} : vector<8x96xbf16> to vector<8x8xbf16>
    %c0_49 = arith.constant 0 : index
    %c3_50 = arith.constant 3 : index
    %c0_51 = arith.constant 0 : index
    %c0_52 = arith.constant 0 : index
    %70 = vector.load %arg6[%c0_49, %c3_50, %c0_51, %c0_52] : memref<1x4x8x8xbf16, #tpu.memory_space<vmem>>, vector<1x1x8x8xbf16>
    %71 = vector.shape_cast %70 : vector<1x1x8x8xbf16> to vector<8x8xbf16>
    %72 = vector.shape_cast %69 : vector<8x8xbf16> to vector<1x1x8x8xbf16>
    tpu.vector_store %arg6[%c0_49, %c3_50, %c0_51, %c0_52], %72 {strides = array<i32>} : memref<1x4x8x8xbf16, #tpu.memory_space<vmem>>, vector<1x1x8x8xbf16>,
    %73 = vector.extract_strided_slice %28 {offsets = [0, 88], sizes = [8, 8], strides = [1, 1]} : vector<8x96xbf16> to vector<8x8xbf16>
    %c0_53 = arith.constant 0 : index
    %c3_54 = arith.constant 3 : index
    %c0_55 = arith.constant 0 : index
    %c0_56 = arith.constant 0 : index
    %74 = vector.load %arg7[%c0_53, %c3_54, %c0_55, %c0_56] : memref<1x4x8x8xbf16, #tpu.memory_space<vmem>>, vector<1x1x8x8xbf16>
    %75 = vector.shape_cast %74 : vector<1x1x8x8xbf16> to vector<8x8xbf16>
    %76 = vector.shape_cast %73 : vector<8x8xbf16> to vector<1x1x8x8xbf16>
    tpu.vector_store %arg7[%c0_53, %c3_54, %c0_55, %c0_56], %76 {strides = array<i32>} : memref<1x4x8x8xbf16, #tpu.memory_space<vmem>>, vector<1x1x8x8xbf16>,
    return
  }
  func.func @transform_0(%arg0: i32, %arg1: i32) -> (i32, i32, i32) {
    %c0_i32 = arith.constant 0 : i32
    %c0_i32_0 = arith.constant 0 : i32
    return %arg0, %arg1, %c0_i32 : i32, i32, i32
  }
  func.func @transform_1(%arg0: i32, %arg1: i32) -> (i32, i32) {
    %c0_i32 = arith.constant 0 : i32
    %c0_i32_0 = arith.constant 0 : i32
    %c0_i32_1 = arith.constant 0 : i32
    return %c0_i32, %c0_i32_0 : i32, i32
  }
  func.func @transform_2(%arg0: i32, %arg1: i32) -> (i32, i32) {
    %c0_i32 = arith.constant 0 : i32
    %c0_i32_0 = arith.constant 0 : i32
    %c0_i32_1 = arith.constant 0 : i32
    return %c0_i32, %c0_i32_0 : i32, i32
  }
  func.func @transform_3(%arg0: i32, %arg1: i32) -> (i32, i32, i32, i32) {
    %c0_i32 = arith.constant 0 : i32
    %c0_i32_0 = arith.constant 0 : i32
    %c0_i32_1 = arith.constant 0 : i32
    return %arg0, %c0_i32, %arg1, %c0_i32_0 : i32, i32, i32, i32
  }
  func.func @transform_4(%arg0: i32, %arg1: i32) -> (i32, i32, i32, i32) {
    %c0_i32 = arith.constant 0 : i32
    %c0_i32_0 = arith.constant 0 : i32
    %c0_i32_1 = arith.constant 0 : i32
    return %arg0, %c0_i32, %arg1, %c0_i32_0 : i32, i32, i32, i32
  }
  func.func @transform_5(%arg0: i32, %arg1: i32) -> (i32, i32, i32, i32) {
    %c0_i32 = arith.constant 0 : i32
    %c0_i32_0 = arith.constant 0 : i32
    %c0_i32_1 = arith.constant 0 : i32
    return %arg0, %c0_i32, %arg1, %c0_i32_0 : i32, i32, i32, i32
  }
}

</mosaic_0001>

<bundles_post_ra>
// kernel: tpu_custom_call.1
= control target key start
LH: loop header
LB: loop body
LE: loop exit
PB: predicated region body
PF: predicated region fallthrough
CT: control target
= control target key end

     0   :  { %s1355_s0 = inlined_call_operand.hbm [shape: f32[2,8,32], index: 0, kind: input, shape index: {}]   ;;  %s1356_s1 = inlined_call_operand.hbm [shape: f32[1,32], index: 1, kind: input, shape index: {}]   ;;  %s1357_s2 = inlined_call_operand.hbm [shape: bf16[32,96], index: 2, kind: input, shape index: {}]   ;;  %s1358_s3 = inlined_call_operand.hbm [shape: bf16[2,4,8,8], index: 3, kind: output, shape index: {0}]   ;;  %s1359_s4 = inlined_call_operand.hbm [shape: bf16[2,4,8,8], index: 4, kind: output, shape index: {1}]   ;;  %s1360_s5 = inlined_call_operand.hbm [shape: bf16[2,4,8,8], index: 5, kind: output, shape index: {2}]  }
   0x1   :  { %1364 = sst [smem:[#allocation16_spill]] %s1355_s0 }
   0x2   :  { %1365 = sst [smem:[#allocation17_spill]] %s1356_s1 }
   0x3   :  { %11 = vsyncpa [#allocation3], 0 }
   0x4   :  { %13 = vsyncpa [#allocation3 + $0x1], 0 }
   0x5   :  { %14 = vsyncpa [#allocation6], 0 }
   0x6   :  { %15 = vsyncpa [#allocation4], 0 }
   0x7   :  { %17 = vsyncpa [#allocation4 + $0x1], 0 }
   0x8   :  { %18 = vsyncpa [#allocation10], 0 }
   0x9   :  { %20 = vsyncpa [#allocation10 + $0x1], 0  ;;  %s1122_s18 = smov 0   ;;  %s1124_s19 = smov 0  }
   0xa   :  { %s1126_s20 = smov 0   ;;  %s1128_s21 = smov 0  }
   0xb   :  { %s1130_s22 = smov 0   ;;  %s1132_s23 = smov 0  }
   0xc LB: > { %s1153_s24 = sadd.s32 4294967295, %s1073_s23   ;;  %s1361_s25 = sadd.s32 4294967294, %s1073_s23   ;;  %s1073_s23 = sphi %s1132_s23, %s26_s23   ;;  %s1069_s22 = sphi %s1130_s22, %s1378_s22   ;;  %s1065_s21 = sphi %s1128_s21, %s1377_s21   ;;  %s1061_s20 = sphi %s1126_s20, %s1376_s20   ;;  %s1057_s19 = sphi %s1124_s19, %s1375_s19   ;;  %s1053_s18 = sphi %s1122_s18, %s1374_s18  }
   0xd   : > { %p60_p0 = scmp.ne.s32.totalorder %s1057_s19, %s1053_s18  ;;  %p61_p1 = scmp.eq.s32.totalorder %s1153_s24, 0 }
   0xe   : > { %p134_p2 = scmp.eq.s32.totalorder %s1361_s25, 1  ;;  %p677_p4 = scmp.ge.s32.totalorder %s1073_s23, 1 }
   0xf   : > { %p1163_p3 = por %p61_p1, %p60_p0  ;;  %p197_p6 = scmp.lt.s32.totalorder %s1073_s23, 3 }
  0x10   : > { %p1168_p5 = por %p134_p2, %p60_p0  ;;  %s1368_s1 = sld [smem:[#allocation17_spill]] }
  0x11   : > { %p1176_p7 = pnand %p677_p4, %p197_p6  ;;  %p680_p8 = scmp.ge.s32.totalorder %s1073_s23, 2 }
  0x12   : > { %s1075_s7 = smov [#allocation5]   ;;  %s220_s11 = sshll.u32 %s1357_s2, 4  ;;  %s221_s11 = int_to_ptr.hbm [resolvable:$true] %s220_s11 }
  0x13   : > { %p740_p9 = pneg %p1176_p7  ;;  %s211_s8 = sshll.u32 %s1075_s7, 4  ;;  %s212_s8 = int_to_ptr.vmem [resolvable:$true] %s211_s8 }
  0x14   : > { %s1076_s12 = smov [#allocation7]   ;;  %s1077_s14 = smov 64  }
  0x15   : > { %p741_p10 = pnand %p740_p9, %p61_p1  ;;  %s222_s13 = sshll.u32 %s1076_s12, 4  ;;  %s223_s13 = int_to_ptr.vmem [resolvable:$true] %s222_s13 }
  0x16   : > { %s209_s30 = sshll.u32 %s1368_s1, 4  ;;  %s1078_s15 = smov 4   ;;  %s210_s30 = int_to_ptr.hbm [resolvable:$true] %s209_s30 }
  0x17   : > { %743 = dma.hbm_to_vmem [thread:$0]  (!%p741_p10), %s210_s30, 16, %s212_s8, [#allocation6]  }
  0x18   : > { %746 = dma.hbm_to_vmem [thread:$0]  (!%p741_p10), %s221_s11, 256, %s223_s13, [#allocation6], %s1077_s14, %s1077_s14, %s1078_s15  }
  0x19   : > { %p128_p11 = scmp.eq.s32.totalorder %s1153_s24, 1  ;;  %s38_s16 = sadd.s32 1, %s1069_s22 }
  0x1a   : > { %p40_p12 = scmp.ge.s32.totalorder %s38_s16, 2  ;;  %s47_s17 = sadd.s32 1, %s1061_s20 }
  0x1b   : > { %p54_p13 = scmp.ne.s32.totalorder %s1061_s20, %s1057_s19  ;;  %p55_p0 = scmp.eq.s32.totalorder %s1073_s23, 0 }
  0x1c   : > { %s1380_s16 = smov (%p40_p12, %s38_s16), 0  ;;  %p763_p4 = scmp.lt.s32.totalorder %s1073_s23, 2 }
  0x1d   : > { %p1196_p2 = por %p128_p11, %p54_p13  ;;  %s42_s29 = ssub.s32 %s1069_s22, %s1380_s16 }
  0x1e   : > { %s236_s30 = sand.u32 1, %s1061_s20   ;;  %p45_p6 = scmp.eq.s32.totalorder %s42_s29, 0 }
  0x1f   : > { %p56_p9 = por %p55_p0, %p54_p13  ;;  %s681_s7 = sshll.u32 %s236_s30, 3 }
  0x20   : > { %s682_s8 = sshll.u32 %s1069_s22, 3  ;;  %s1371_s0 = sld [smem:[#allocation16_spill]] }
  0x21   : > { %s1206_s9 = scalar_select %p45_p6, %s1061_s20, %s47_s17  }
  0x22   : > { %s240_s14 = scalar_lea.vmem [#allocation2], %s681_s7  ;;  %p748_p10 = pnand %p763_p4, %p56_p9 }
  0x23   : > { %s249_s15 = sshll.u32 %s240_s14, 4  ;;  %s237_s25 = scalar_lea.sflag [#allocation3], %s236_s30  ;;  %s250_s15 = int_to_ptr.vmem [resolvable:$true] %s249_s15 }
  0x24   : > { %258 = sbr.rel (%p1176_p7) target bundleno = 489 (0x1e9), region = 32  ;;  %s1216_s17 = sand.u32 (!%p1176_p7), 1, %s1057_s19  }
  0x25   : > { %s684_s29 = sshll.u32 (!%p1176_p7), %s1216_s17, 3 }
  0x26   : > { %s245_s12 = scalar_lea.hbm %s1371_s0, %s682_s8  ;;  %s261_s8 = scalar_lea.sflag (!%p1176_p7), [#allocation3], %s1216_s17 }
  0x27   : > { %s247_s13 = sshll.u32 %s245_s12, 4  ;;  %s264_s10 = scalar_lea.vmem (!%p1176_p7), [#allocation2], %s684_s29  ;;  %s248_s13 = int_to_ptr.hbm [resolvable:$true] %s247_s13 }
  0x28   : > { %750 = dma.hbm_to_vmem [thread:$0]  (!%p748_p10), %s248_s13, 128, %s250_s15, %s237_s25  }
  0x29   : > { %1036 = dma.done.wait (%p1163_p3), %s261_s8, 128  }
  0x2a   : > { %1038 = vsyncadd (%p1163_p3), %s261_s8, 4294967168 }
  0x2b   : > { %1040 = dma.done.wait (%p61_p1), [#allocation6], 272  }
  0x2c   : > { %1042 = vsyncadd (%p61_p1), [#allocation6], 4294967024  ;;  %vm315_vm0 = vcmask 261120   ;;  %v313_v0 = vld [vmem:[%s264_s10] sm:$0xff]  ;;  %v1079_v4 = vmov 32.0   ;;  %v719_v12 = vld [vmem:[#allocation7] sm:$0xff] }
  0x2d   : > { %v316_v1 = vsel %vm315_vm0, %v313_v0, 0.0  ;;  %v327_v2 = vmul.f32 %v313_v0, %v313_v0  ;;  %833 = vrcp.f32 %v1079_v4  ;;  %v720_v10 = vld [vmem:[#allocation7 + $0x8] sm:$0xff]  ;;  %v832_v28 = vld [vmem:[#allocation5] ss:$0 sm:$0xff]  ;;  %s1232_s25 = sshll.u32 %s1216_s17, 4  ;;  %vm386_vm5 = vcmask 60416  }
  0x2e   : > { %317 = vadd.xlane.f32.xlu0 %v316_v1  ;;  %378 = vmatpush.bf16.msra.mxu0 %v720_v10  ;;  %s1362_s26 = smov 64   ;;  %s1081_s6 = smov 80  }
  0x2f   : > { %v328_v3 = vsel %vm315_vm0, %v327_v2, 0.0  ;;  %s1236_s30 = scalar_lea.vmem [#allocation8], %s1232_s25  ;;  %s1082_s7 = smov 96  }
  0x30   : > { %s1083_s11 = smov 72   ;;  %s1084_s12 = smov 88  }
  0x31   : > { %s1085_s13 = smov 56   ;;  %s1086_s14 = smov 120  }
  0x32   : > { %379 = vmatpush.bf16.msra.mxu0 %v719_v12  ;;  %s1087_s15 = smov 48   ;;  %s1088_s29 = smov 112  }
  0x33   : > { %v834_v5 = vpop.eup %833  ;;  %s1089_s8 = smov 40   ;;  %s1090_s10 = smov 104  }
  0x34   : > { %v320_v6 = vmul.f32 32.0, %v834_v5  ;;  %vm324_vm1 = vweird.f32 %v834_v5 }
  0x36   : > { %329 = vadd.xlane.f32.xlu0 %v328_v3  ;;  %v321_v7 = vsub.f32 1.0, %v320_v6 }
  0x38   : > { %v322_v8 = vmul.f32 %v834_v5, %v321_v7 }
  0x3a   : > { %v323_v9 = vadd.f32 %v834_v5, %v322_v8 }
  0x3c   : > { %v325_v13 = vsel %vm324_vm1, %v834_v5, %v323_v9 }
  0xa1   : > { %v318_v11 = vpop.xlane.xlu0 %317 }
  0xa2   : > { %v326_v14 = vmul.f32 %v325_v13, %v318_v11 }
  0xa4   : > { %v332_v16 = vmul.f32 %v326_v14, %v326_v14  ;;  %v335_v27 = vsub.f32 %v313_v0, %v326_v14 }
  0xa9   : > { %v330_v15 = vpop.xlane.xlu0 %329 }
  0xaa   : > { %v331_v17 = vmul.f32 %v330_v15, %v325_v13 }
  0xac   : > { %v333_v18 = vsub.f32 %v331_v17, %v332_v16 }
  0xae   : > { %v334_v19 = vmax.f32 %v333_v18, 0.0 }
  0xb0   : > { %v336_v20 = vadd.f32 1e-05, %v334_v19 }
  0xb2   : > { %835 = vrsqrt.f32 %v336_v20  ;;  %vm343_vm3 = vweird.f32 %v336_v20 }
  0xb8   : > { %v836_v21 = vpop.eup %835 }
  0xb9   : > { %v338_v22 = vmul.f32 %v836_v21, %v336_v20  ;;  %vm344_vm2 = vweird.f32 %v836_v21 }
  0xba   : > { %vm345_vm4 = vmor %vm343_vm3, %vm344_vm2 }
  0xbb   : > { %v339_v23 = vmul.f32 %v836_v21, %v338_v22 }
  0xbd   : > { %v340_v24 = vmul.f32 0.5, %v339_v23 }
  0xbf   : > { %v341_v25 = vsub.f32 1.5, %v340_v24 }
  0xc1   : > { %v342_v26 = vmul.f32 %v836_v21, %v341_v25 }
  0xc3   : > { %v346_v29 = vsel %vm345_vm4, %v836_v21, %v342_v26 }
  0xc4   : > { %v347_v30 = vmul.f32 %v346_v29, %v335_v27 }
  0xc6   : > { %v351_v31 = vmul.f32 %v832_v28, %v347_v30 }
  0xc8   : > { %v352_v32 = vpack.c.bf16 %v351_v31, %v351_v31 }
  0xca   : > { %698 = vmatmul.msk.bf16.vlgmr.msra.gmra.mxu0 %vm315_vm0, %v352_v32 }
 0x147   : > { %v381_v33 = vpop.f32.mrf.mxu0 }
 0x148   : > { %v385_v34 = vpack.c.bf16 %v381_v33, %v381_v33 }
 0x14a   : > { %393 = vrot.lane.b32.xlu0 %v385_v34, %s1362_s26  ;;  %417 = vrot.lane.b32.xlu2 %v385_v34, %s1081_s6  ;;  %387 = vst.msk [vmem:[%s1236_s30] sm:$0xf] %vm386_vm5, %v385_v34  ;;  %s304_s6 = scalar_lea.vmem [#allocation9], %s1232_s25 }
 0x14b   : > { %389 = vrot.lane.b32.xlu1 %v385_v34, %s1082_s7  ;;  %s311_s7 = scalar_lea.vmem [#allocation11], %s1232_s25 }
 0x14c   : > { %s502_s26 = sshll.u32 %s311_s7, 4  ;;  %s1265_s26 = int_to_ptr.vmem [resolvable:$true] %s502_s26 }
 0x14f   : > { %v383_v35 = vpop.f32.mrf.mxu0 }
 0x152   : > { %432 = vrot.lane.b32.xlu2 %v385_v34, %s1083_s11  ;;  %s1246_s11 = sshll.u32 %s1065_s21, 4 }
 0x153   : > { %402 = vrot.lane.b32.xlu1 %v385_v34, %s1084_s12  ;;  %s501_s21 = scalar_lea.hbm %s1360_s5, %s1246_s11 }
 0x154   : > { %s1262_s0 = sshll.u32 %s501_s21, 4  ;;  %s505_s0 = int_to_ptr.hbm [resolvable:$true] %s1262_s0 }
 0x15a   : > { %407 = vrot.lane.b32.xlu2 %v385_v34, %s1085_s13 }
 0x15b   : > { %397 = vrot.lane.b32.xlu1 %v385_v34, %s1086_s14  ;;  %s483_s14 = scalar_lea.hbm %s1359_s4, %s1246_s11 }
 0x162   : > { %422 = vrot.lane.b32.xlu2 %v385_v34, %s1087_s15  ;;  %s947_s15 = scalar_lea.hbm %s1359_s4, 32 }
 0x163   : > { %412 = vrot.lane.b32.xlu1 %v385_v34, %s1088_s29  ;;  %s484_s29 = sshll.u32 %s304_s6, 4  ;;  %s485_s29 = int_to_ptr.vmem [resolvable:$true] %s484_s29 }
 0x16a   : > { %437 = vrot.lane.b32.xlu2 %v385_v34, %s1089_s8  ;;  %s447_s8 = sand.u32 1, %s1153_s24  }
 0x16b   : > { %427 = vrot.lane.b32.xlu1 %v385_v34, %s1090_s10  ;;  %s1260_s10 = sshll.u32 %s483_s14, 4  ;;  %s1270_s24 = scalar_lea.sflag [#allocation10], %s447_s8  ;;  %s487_s10 = int_to_ptr.hbm [resolvable:$true] %s1260_s10 }
 0x16c   : > { %s941_s12 = sshra.s32 %s487_s10, 4  ;;  %s942_s12 = int_to_ptr.hbm [resolvable:$true] %s941_s12 }
 0x16d   : > { %s943_s13 = scalar_lea.hbm %s942_s12, 16  ;;  %p948_p11 = scmp.lt.s32.totalorder %s942_s12, %s1359_s4 }
 0x16e   : > { %p944_p1 = scmp.ne.s32.totalorder %s942_s12, %s943_s13  ;;  %p949_p12 = scmp.lt.s32.totalorder %s947_s15, %s943_s13 }
 0x170   : > { %p945_p3 = pnand %p944_p1, %p1196_p2  ;;  %p950_p13 = por %p949_p12, %p948_p11 }
 0x172   : > { %p946_p7 = pneg %p945_p3 }
 0x174   : > { %p951_p0 = pnand %p950_p13, %p946_p7 }
 0x1a4   : > { %v418_v36 = vpop.permute.xlu2 %417 }
 0x1a5   : > { %703 = vst.msk [vmem:[%s304_s6 + $0x8] sm:$0xf] %vm386_vm5, %v418_v36 }
 0x1ac   : > { %v433_v37 = vpop.permute.xlu2 %432 }
 0x1ad   : > { %706 = vst.msk [vmem:[%s304_s6 + $0xc] sm:$0xf] %vm386_vm5, %v433_v37 }
 0x1b4   : > { %v408_v38 = vpop.permute.xlu2 %407 }
 0x1b5   : > { %701 = vst.msk [vmem:[%s311_s7 + $0x4] sm:$0xf] %vm386_vm5, %v408_v38 }
 0x1bc   : > { %v394_v39 = vpop.permute.xlu0 %393  ;;  %v423_v40 = vpop.permute.xlu2 %422 }
 0x1bd   : > { %396 = vst.msk [vmem:[%s311_s7] sm:$0xf] %vm386_vm5, %v394_v39  ;;  %v390_v41 = vpop.permute.xlu1 %389 }
 0x1be   : > { %704 = vst.msk [vmem:[%s311_s7 + $0x8] sm:$0xf] %vm386_vm5, %v423_v40 }
 0x1bf   : > { %392 = vst.msk [vmem:[%s304_s6] sm:$0xf] %vm386_vm5, %v390_v41 }
 0x1c4   : > { %v438_v42 = vpop.permute.xlu2 %437 }
 0x1c5   : > { %707 = vst.msk [vmem:[%s311_s7 + $0xc] sm:$0xf] %vm386_vm5, %v438_v42  ;;  %v403_v43 = vpop.permute.xlu1 %402 }
 0x1c6   : > { %700 = vst.msk [vmem:[%s304_s6 + $0x4] sm:$0xf] %vm386_vm5, %v403_v43 }
 0x1c7   : > { %954 = shalt.err (!%p951_p0)
}
 0x1c8   : > { %s1091_s6 = smov 4   ;;  %s1372_s7 = smov 64  }
 0x1c9   : > { %735 = dma.vmem_to_hbm [thread:$0]  (%p1196_p2), %s485_s29, 256, %s487_s10, %s1270_s24, %s1372_s7, %s1372_s7, %s1091_s6  }
 0x1ca   : > { %s969_s8 = sshra.s32 %s505_s0, 4  ;;  %s975_s13 = scalar_lea.hbm %s1360_s5, 32  ;;  %s970_s8 = int_to_ptr.hbm [resolvable:$true] %s969_s8 }
 0x1cb   : > { %s971_s14 = scalar_lea.hbm %s970_s8, 16  ;;  %p976_p10 = scmp.lt.s32.totalorder %s970_s8, %s1360_s5 }
 0x1cc   : > { %p972_p4 = scmp.ne.s32.totalorder %s970_s8, %s971_s14  ;;  %p977_p1 = scmp.lt.s32.totalorder %s975_s13, %s971_s14 }
 0x1ce   : > { %p973_p6 = pnand %p972_p4, %p1196_p2  ;;  %p978_p3 = por %p977_p1, %p976_p10 }
 0x1d0   : > { %p974_p9 = pneg %p973_p6 }
 0x1d2   : > { %p979_p7 = pnand %p978_p3, %p974_p9 }
 0x1d4   : > { %982 = shalt.err (!%p979_p7)
}
 0x1d5   : > { %736 = dma.vmem_to_hbm [thread:$0]  (%p1196_p2), %s1265_s26, 256, %s505_s0, %s1270_s24, %s1372_s7, %s1372_s7, %s1091_s6   ;;  %v398_v44 = vpop.permute.xlu1 %397 }
 0x1d6   : > { %699 = vst.msk [vmem:[%s1236_s30 + $0x4] sm:$0xf] %vm386_vm5, %v398_v44  ;;  %s465_s21 = scalar_lea.hbm %s1358_s3, %s1246_s11  ;;  %s466_s8 = sshll.u32 %s1236_s30, 4  ;;  %s467_s8 = int_to_ptr.vmem [resolvable:$true] %s466_s8 }
 0x1d7   : > { %s468_s14 = sshll.u32 %s465_s21, 4  ;;  %s443_s1 = scalar_lea.sflag [#allocation4], %s1216_s17  ;;  %s469_s14 = int_to_ptr.hbm [resolvable:$true] %s468_s14 }
 0x1d8   : > { %s997_s0 = sshra.s32 %s469_s14, 4  ;;  %s1003_s13 = scalar_lea.hbm %s1358_s3, 32  ;;  %s998_s0 = int_to_ptr.hbm [resolvable:$true] %s997_s0 }
 0x1d9   : > { %s999_s26 = scalar_lea.hbm %s998_s0, 16  ;;  %p1004_p0 = scmp.lt.s32.totalorder %s998_s0, %s1358_s3 }
 0x1da   : > { %p1000_p11 = scmp.ne.s32.totalorder %s998_s0, %s999_s26  ;;  %p1005_p4 = scmp.lt.s32.totalorder %s1003_s13, %s999_s26 }
 0x1dc   : > { %p1001_p12 = pnand %p1000_p11, %p1196_p2  ;;  %p1006_p6 = por %p1005_p4, %p1004_p0 }
 0x1dd   : > { %v413_v45 = vpop.permute.xlu1 %412 }
 0x1de   : > { %702 = vst.msk [vmem:[%s1236_s30 + $0x8] sm:$0xf] %vm386_vm5, %v413_v45  ;;  %p1002_p13 = pneg %p1001_p12 }
 0x1e0   : > { %p1007_p9 = pnand %p1006_p6, %p1002_p13 }
 0x1e5   : > { %v428_v46 = vpop.permute.xlu1 %427 }
 0x1e6   : > { %705 = vst.msk [vmem:[%s1236_s30 + $0xc] sm:$0xf] %vm386_vm5, %v428_v46 }
 0x1e7   : > { %1010 = shalt.err (!%p1007_p9)
}
 0x1e8   : > { %734 = dma.vmem_to_hbm [thread:$0]  (%p1196_p2), %s467_s8, 256, %s469_s14, %s443_s1, %s1372_s7, %s1372_s7, %s1091_s6  }
 0x1e9 PF: > { %s519_s17 = sand.u32 1, %s1053_s18   ;;  %p752_p10 = pnand %p680_p8, %p1168_p5 }
 0x1ea   : > { %s520_s30 = scalar_lea.sflag [#allocation4], %s519_s17 }
 0x1eb   : > { %p753_p1 = pneg %p752_p10 }
 0x1ed   : > { %1044 = dma.done.wait (%p753_p1), %s520_s30, 256  }
 0x1ee   : > { %1046 = vsyncadd (%p753_p1), %s520_s30, 4294967040  ;;  %s1373_s15 = sadd.s32 4294967294, %s1073_s23  }
 0x1ef   : > { %s529_s29 = sand.u32 1, %s1373_s15  }
 0x1f0   : > { %s530_s28 = scalar_lea.sflag [#allocation10], %s529_s29 }
 0x1f1   : > { %1048 = dma.done.wait (%p753_p1), %s530_s28, 512  }
 0x1f2   : > { %1050 = vsyncadd (%p753_p1), %s530_s28, 4294966784  ;;  %s26_s23 = sadd.s32 1, %s1073_s23   ;;  %s1374_s18 = smov %s1057_s19 }
 0x1f3   : > { %p23_p2 = scmp.ge.s32.totalorder %s26_s23, 4   ;;  %s1375_s19 = smov %s1061_s20 }
 0x1f4   : > { %s1376_s20 = smov %s1206_s9  ;;  %s1377_s21 = smov %s1069_s22 }
 0x1f5   : > { %s1378_s22 = smov %s1380_s16  ;;  %25 = sbr.rel (!%p23_p2) target bundleno = 12 (0xc), region = 126 }
 0x1fa   :  { %546 = vsyncpa [#allocation3], 1 }
 0x1fb   :  { %548 = vsyncpa [#allocation3 + $0x1], 1 }
 0x1fc   :  { %549 = vsyncpa [#allocation6], 1 }
 0x1fd   :  { %550 = vsyncpa [#allocation4], 1 }
 0x1fe   :  { %552 = vsyncpa [#allocation4 + $0x1], 1 }
 0x1ff   :  { %553 = vsyncpa [#allocation10], 1 }
 0x200   :  { %555 = vsyncpa [#allocation10 + $0x1], 1 }

</bundles_post_ra>
